<compile_context>
chip_gen: v7x
topology: tpu7x:2x2x1
jax: 0.10.0
libtpu: 0.0.40
codegen_flags: <defaults>
</compile_context>

<pallas_src>
import functools

import jax
import jax.numpy as jnp
from jax.experimental import pallas as pl
from jax.experimental.pallas import tpu as pltpu

_LANE = 128
_BF16_SUBLANE = 16  # bf16 packs 16 rows per sublane tile


def _mlp_kernel(x_ref, w1_ref, b1_ref, w2_ref, b2_ref, o_ref):
    # nn.Dropout(0.3) is identity at inference time.
    # TODO(synk): training-mode dropout would use pltpu.prng_seed / prng_random_bits.
    x = x_ref[...]                                                     # [TB, E] bf16
    h = jnp.dot(x, w1_ref[...], preferred_element_type=jnp.float32)   # MXU, f32 acc
    h = jnp.maximum(h + b1_ref[...], 0.0)                             # bias + ReLU (f32)
    h = h.astype(jnp.bfloat16)                                        # bf16 into 2nd MXU pass
    logits = jnp.dot(h, w2_ref[...], preferred_element_type=jnp.float32)
    o_ref[...] = logits + b2_ref[...]                                 # f32, lane-dense output


def prepare_classifier_params(w1, b1, w2, b2, *, lane_pad_output=True):
    """One-time weight preprocessing (hoisted OUT of the per-call forward).

    w1: [E, 768]   (pre-transposed vs PyTorch's [out, in])
    b1: [768] or [1, 768]
    w2: [768, L]
    b2: [L] or [1, L]

    Returns (params, num_labels) where `params` already carries the bf16 casts
    and the lane-dense class-dim padding, so the forward adds no extra passes
    over the weights.
    """
    E, H = w1.shape
    L = w2.shape[1]

    w1_bf = w1.astype(jnp.bfloat16)
    w2_bf = w2.astype(jnp.bfloat16)
    b1_f = jnp.reshape(b1, (1, H)).astype(jnp.float32)
    b2_f = jnp.reshape(b2, (1, L)).astype(jnp.float32)

    if lane_pad_output:
        Lp = ((L + _LANE - 1) // _LANE) * _LANE   # lane-dense second matmul / store
    else:
        Lp = L                                     # v5e variant: skip zero-weight bytes
    w2_p = jnp.pad(w2_bf, ((0, 0), (0, Lp - L)))
    b2_p = jnp.pad(b2_f, ((0, 0), (0, Lp - L)))

    params = (w1_bf, b1_f, w2_p, b2_p)
    return jax.tree_util.tree_map(jax.device_put, params), L


def riddle_classifier_forward(embeddings, params, *, num_labels, tile_b=None):
    """Eval-mode forward of the classifier MLP head.

    embeddings: [B, E] (any float dtype; cast to bf16 internally)
    params:     output of prepare_classifier_params
    Returns float32 logits [B, num_labels].
    """
    w1_bf, b1_f, w2_p, b2_p = params
    B, E = embeddings.shape
    H = w1_bf.shape[1]
    Lp = w2_p.shape[1]
    L = num_labels

    # ---- batch tiling -------------------------------------------------------
    # Small batches: one grid step covering the whole batch (no per-step
    # overhead to amortize).  Large batches: 512-row tiles.
    if tile_b is None:
        if B <= 512:
            tile_b = ((B + _BF16_SUBLANE - 1) // _BF16_SUBLANE) * _BF16_SUBLANE
        else:
            tile_b = 512
    # bf16 sublane packing: never use a half-packed (8-row) tile.
    tile_b = max(_BF16_SUBLANE,
                 ((tile_b + _BF16_SUBLANE - 1) // _BF16_SUBLANE) * _BF16_SUBLANE)
    Bp = ((B + tile_b - 1) // tile_b) * tile_b
    n_tiles = Bp // tile_b

    # Activation-only per-call preprocessing (weights were hoisted).
    x_p = jnp.pad(embeddings.astype(jnp.bfloat16), ((0, Bp - B), (0, 0)))

    # VMEM budget sanity: resident weights + double-buffered activation tiles
    # must fit the conservative scoped default (v5e 16 MiB; v7x physical VMEM
    # is only 64 MiB).
    weight_bytes = (w1_bf.size + w2_p.size) * 2 + (b1_f.size + b2_p.size) * 4
    act_bytes = 2 * (tile_b * E * 2 + tile_b * Lp * 4)
    assert weight_bytes + act_bytes < 16 * 1024 * 1024, (
        "weights no longer fit resident in scoped VMEM; "
        "tile the E (contraction) dim with an 'arbitrary' reduction axis "
        "and set vmem_limit_bytes explicitly")
    # TODO(synk): K-tiled (contraction-axis) path for much larger E*H heads.

    # Only split the batch across TensorCores (v7x megacore) when each core
    # gets at least one full 128-row tile; otherwise the duplicated per-core
    # weight DMA dominates this weight-bound kernel.
    parallel_batch = (n_tiles >= 2) and (tile_b >= 128)
    semantics = ("parallel",) if parallel_batch else ("arbitrary",)

    nbytes = lambda a: a.size * a.dtype.itemsize
    cost = pl.CostEstimate(
        flops=2 * Bp * (E * H + H * Lp),
        transcendentals=0,
        bytes_accessed=nbytes(x_p) + weight_bytes + Bp * Lp * 4,
    )

    logits_p = pl.pallas_call(
        _mlp_kernel,
        out_shape=jax.ShapeDtypeStruct((Bp, Lp), jnp.float32),
        grid_spec=pl.GridSpec(
            grid=(n_tiles,),
            in_specs=[
                pl.BlockSpec((tile_b, E), lambda i: (i, 0)),   # activations: per-tile
                pl.BlockSpec((E, H), lambda i: (0, 0)),        # w1: VMEM-resident
                pl.BlockSpec((1, H), lambda i: (0, 0)),        # b1 (full-array block)
                pl.BlockSpec((H, Lp), lambda i: (0, 0)),       # w2: VMEM-resident
                pl.BlockSpec((1, Lp), lambda i: (0, 0)),       # b2 (full-array block)
            ],
            out_specs=pl.BlockSpec((tile_b, Lp), lambda i: (i, 0)),
        ),
        compiler_params=pltpu.CompilerParams(
            dimension_semantics=semantics,
        ),
        cost_estimate=cost,
    )(x_p, w1_bf, b1_f, w2_p, b2_p)

    return logits_p[:B, :L]


def _torch_linear_init(key, in_dim, out_dim):
    """Deterministic init mimicking nn.Linear: U(-1/sqrt(in), 1/sqrt(in))."""
    kw, kb = jax.random.split(key)
    bound = 1.0 / (in_dim ** 0.5)
    # Stored transposed: [in_dim, out_dim] (PyTorch keeps [out_dim, in_dim]).
    w = jax.random.uniform(kw, (in_dim, out_dim), jnp.float32, -bound, bound)
    b = jax.random.uniform(kb, (1, out_dim), jnp.float32, -bound, bound)
    return w, b


def reference_forward(embeddings, w1, b1, w2, b2):
    """Pure-JAX reference matching the kernel's numerics (bf16 weights/acts,
    f32 accumulation)."""
    xf = embeddings.astype(jnp.bfloat16).astype(jnp.float32)
    w1f = w1.astype(jnp.bfloat16).astype(jnp.float32)
    w2f = w2.astype(jnp.bfloat16).astype(jnp.float32)
    h = jnp.maximum(xf @ w1f + jnp.reshape(b1, (1, -1)), 0.0)
    h = h.astype(jnp.bfloat16).astype(jnp.float32)
    return h @ w2f + jnp.reshape(b2, (1, -1))


if __name__ == "__main__":
    # Shapes consistent with the module: 16 sentences, MiniLM-style embedding
    # dim 384, hidden 768 (hard-coded), 8 riddle-structure labels.
    B, E, H, L = 16, 384, 768, 8

    root = jax.random.PRNGKey(0)
    k_emb, k_l1, k_l2, k_big = jax.random.split(root, 4)

    embeddings = jax.random.normal(k_emb, (B, E), jnp.float32)
    w1, b1 = _torch_linear_init(k_l1, E, H)
    w2, b2 = _torch_linear_init(k_l2, H, L)

    # One-time weight preprocessing (hoisted out of the forward).
    params, num_labels = prepare_classifier_params(w1, b1, w2, b2)

    fwd = jax.jit(functools.partial(riddle_classifier_forward,
                                    num_labels=num_labels))

    # Small batch: single grid step (grid=(1,)), tile_b=16, "arbitrary".
    logits = fwd(embeddings, params)
    jax.block_until_ready(logits)

    ref = reference_forward(embeddings, w1, b1, w2, b2)
    assert logits.shape == (B, L)
    assert jnp.allclose(logits, ref, atol=2e-3, rtol=2e-3), "mismatch vs reference (small B)"

    # Larger batch: exercises the multi-tile "parallel" path (tile_b=512, grid=(2,)).
    B2 = 1024
    emb_big = jax.random.normal(k_big, (B2, E), jnp.float32)
    logits_big = fwd(emb_big, params)
    jax.block_until_ready(logits_big)
    ref_big = reference_forward(emb_big, w1, b1, w2, b2)
    assert logits_big.shape == (B2, L)
    assert jnp.allclose(logits_big, ref_big, atol=2e-3, rtol=2e-3), "mismatch vs reference (large B)"

    print("KERNEL_OK")
</pallas_src>

<mosaic_0001>
module attributes {stable_mosaic.version = 11 : i64} {
  func.func @_mlp_kernel(%arg0: i32, %arg1: memref<16x384xbf16, #tpu.memory_space<vmem>>, %arg2: memref<384x768xbf16, #tpu.memory_space<vmem>>, %arg3: memref<1x768xf32, #tpu.memory_space<vmem>>, %arg4: memref<768x128xbf16, #tpu.memory_space<vmem>>, %arg5: memref<1x128xf32, #tpu.memory_space<vmem>>, %arg6: memref<16x128xf32, #tpu.memory_space<vmem>>) attributes {dimension_semantics = [#tpu.dimension_semantics<arbitrary>], iteration_bounds = array<i64: 1>, scalar_prefetch = 0 : i64, scratch_operands = 0 : i64, tpu.core_type = #tpu.core_type<tc>, window_params = [{transform_indices = @transform_0, window_bounds = array<i64: 16, 384>}, {pipeline_mode = #tpu.pipeline_mode<synchronous>, transform_indices = @transform_1, window_bounds = array<i64: 384, 768>}, {pipeline_mode = #tpu.pipeline_mode<synchronous>, transform_indices = @transform_2, window_bounds = array<i64: 1, 768>}, {pipeline_mode = #tpu.pipeline_mode<synchronous>, transform_indices = @transform_3, window_bounds = array<i64: 768, 128>}, {pipeline_mode = #tpu.pipeline_mode<synchronous>, transform_indices = @transform_4, window_bounds = array<i64: 1, 128>}, {transform_indices = @transform_5, window_bounds = array<i64: 16, 128>}]} {
    %c0 = arith.constant 0 : index
    %c0_0 = arith.constant 0 : index
    %0 = vector.load %arg1[%c0, %c0_0] : memref<16x384xbf16, #tpu.memory_space<vmem>>, vector<16x384xbf16>
    %c0_1 = arith.constant 0 : index
    %c0_2 = arith.constant 0 : index
    %1 = vector.load %arg2[%c0_1, %c0_2] : memref<384x768xbf16, #tpu.memory_space<vmem>>, vector<384x768xbf16>
    %cst = arith.constant dense<0.000000e+00> : vector<16x768xf32>
    %2 = tpu.matmul %0, %1, %cst {dimension_numbers = #tpu.dot_dimension_numbers<[1], [0], [0], [1], [0, 0, 1, 1], [], []>} : vector<16x384xbf16>, vector<384x768xbf16>, vector<16x768xf32> -> vector<16x768xf32>
    %c0_3 = arith.constant 0 : index
    %c0_4 = arith.constant 0 : index
    %3 = vector.load %arg3[%c0_3, %c0_4] : memref<1x768xf32, #tpu.memory_space<vmem>>, vector<1x768xf32>
    %4 = vector.broadcast %3 : vector<1x768xf32> to vector<16x768xf32>
    %5 = arith.addf %2, %4 : vector<16x768xf32>
    %cst_5 = arith.constant 0.000000e+00 : f32
    %6 = vector.broadcast %cst_5 : f32 to vector<16x768xf32>
    %7 = arith.maximumf %5, %6 : vector<16x768xf32>
    %8 = arith.truncf %7 : vector<16x768xf32> to vector<16x768xbf16>
    %c0_6 = arith.constant 0 : index
    %c0_7 = arith.constant 0 : index
    %9 = vector.load %arg4[%c0_6, %c0_7] : memref<768x128xbf16, #tpu.memory_space<vmem>>, vector<768x128xbf16>
    %cst_8 = arith.constant dense<0.000000e+00> : vector<16x128xf32>
    %10 = tpu.matmul %8, %9, %cst_8 {dimension_numbers = #tpu.dot_dimension_numbers<[1], [0], [0], [1], [0, 0, 1, 1], [], []>} : vector<16x768xbf16>, vector<768x128xbf16>, vector<16x128xf32> -> vector<16x128xf32>
    %c0_9 = arith.constant 0 : index
    %c0_10 = arith.constant 0 : index
    %11 = vector.load %arg5[%c0_9, %c0_10] : memref<1x128xf32, #tpu.memory_space<vmem>>, vector<1x128xf32>
    %12 = vector.broadcast %11 : vector<1x128xf32> to vector<16x128xf32>
    %13 = arith.addf %10, %12 : vector<16x128xf32>
    %c0_11 = arith.constant 0 : index
    %c0_12 = arith.constant 0 : index
    %14 = vector.load %arg6[%c0_11, %c0_12] : memref<16x128xf32, #tpu.memory_space<vmem>>, vector<16x128xf32>
    tpu.vector_store %arg6[%c0_11, %c0_12], %13 {strides = array<i32>} : memref<16x128xf32, #tpu.memory_space<vmem>>, vector<16x128xf32>,
    return
  }
  func.func @transform_0(%arg0: i32) -> (i32, i32) {
    %c0_i32 = arith.constant 0 : i32
    %c0_i32_0 = arith.constant 0 : i32
    return %arg0, %c0_i32 : i32, i32
  }
  func.func @transform_1(%arg0: i32) -> (i32, i32) {
    %c0_i32 = arith.constant 0 : i32
    %c0_i32_0 = arith.constant 0 : i32
    %c0_i32_1 = arith.constant 0 : i32
    return %c0_i32, %c0_i32_0 : i32, i32
  }
  func.func @transform_2(%arg0: i32) -> (i32, i32) {
    %c0_i32 = arith.constant 0 : i32
    %c0_i32_0 = arith.constant 0 : i32
    %c0_i32_1 = arith.constant 0 : i32
    return %c0_i32, %c0_i32_0 : i32, i32
  }
  func.func @transform_3(%arg0: i32) -> (i32, i32) {
    %c0_i32 = arith.constant 0 : i32
    %c0_i32_0 = arith.constant 0 : i32
    %c0_i32_1 = arith.constant 0 : i32
    return %c0_i32, %c0_i32_0 : i32, i32
  }
  func.func @transform_4(%arg0: i32) -> (i32, i32) {
    %c0_i32 = arith.constant 0 : i32
    %c0_i32_0 = arith.constant 0 : i32
    %c0_i32_1 = arith.constant 0 : i32
    return %c0_i32, %c0_i32_0 : i32, i32
  }
  func.func @transform_5(%arg0: i32) -> (i32, i32) {
    %c0_i32 = arith.constant 0 : i32
    %c0_i32_0 = arith.constant 0 : i32
    return %arg0, %c0_i32 : i32, i32
  }
}

</mosaic_0001>

<bundles_post_ra>
// kernel: riddle_classifier_forward.1
= control target key start
LH: loop header
LB: loop body
LE: loop exit
PB: predicated region body
PF: predicated region fallthrough
CT: control target
= control target key end

     0   :  { %10 = vsyncpa [#allocation3], 0  ;;  %s2488_s0 = inlined_call_operand.vmem [shape: bf16[16,384], index: 0, kind: input, shape index: {}]   ;;  %s2489_s1 = inlined_call_operand.hbm [shape: bf16[384,768], index: 1, kind: input, shape index: {}]   ;;  %s2490_s2 = inlined_call_operand.vmem [shape: f32[1,768], index: 2, kind: input, shape index: {}]   ;;  %s2491_s3 = inlined_call_operand.hbm [shape: bf16[768,128], index: 3, kind: input, shape index: {}]   ;;  %s2492_s4 = inlined_call_operand.vmem [shape: f32[1,128], index: 4, kind: input, shape index: {}]   ;;  %s2493_s5 = inlined_call_operand.vmem [shape: f32[16,128], index: 5, kind: output, shape index: {}]  }
   0x1   :  { %11 = vsyncpa [#allocation5], 0  ;;  %s2372_s18 = smov [#allocation2]   ;;  %s2324_s22 = scalar_lea.hbm %s2489_s1, 18432 }
   0x2   :  { %s19_s19 = sshll.u32 %s2372_s18, 4  ;;  %p2325_p0 = scmp.ne.s32.totalorder %s2489_s1, %s2324_s22  ;;  %s20_s19 = int_to_ptr.vmem [resolvable:$true] %s19_s19 }
   0x3   :  { %p2328_p1 = scmp.lt.u32.totalorder %s2324_s22, %s2489_s1 }
   0x5   :  { %p2330_p2 = pnand %p2328_p1, %p2325_p0 }
   0x7   :  { %2333 = shalt.err (!%p2330_p2)
}
   0x8   :  { %s2334_s27 = scalar_lea.vmem %s20_s19, 18432  ;;  %p2339_p4 = scmp.lt.s32.totalorder %s20_s19, %s20_s19 }
   0x9   :  { %p2335_p3 = scmp.ne.s32.totalorder %s20_s19, %s2334_s27  ;;  %p2340_p5 = scmp.lt.s32.totalorder %s2334_s27, %s2334_s27 }
   0xb   :  { %p2341_p6 = por %p2340_p5, %p2339_p4 }
   0xd   :  { %p2342_p7 = pnand %p2341_p6, %p2335_p3 }
   0xf   :  { %2345 = shalt.err (!%p2342_p7)
}
  0x10   :  { %s2373_s28 = smov 384   ;;  %s2374_s29 = smov 24  }
  0x11   :  { %25 = dma.hbm_to_vmem [thread:$0]  %s2489_s1, 18432, %s20_s19, [#allocation3], %s2373_s28, %s2373_s28, %s2374_s29  }
  0x12   :  { %s2375_s7 = smov [#allocation4]   ;;  %s2346_s11 = scalar_lea.hbm %s2491_s3, 6144 }
  0x13   :  { %s33_s8 = sshll.u32 %s2375_s7, 4  ;;  %p2347_p8 = scmp.ne.s32.totalorder %s2491_s3, %s2346_s11  ;;  %s34_s8 = int_to_ptr.vmem [resolvable:$true] %s33_s8 }
  0x14   :  { %p2350_p9 = scmp.lt.u32.totalorder %s2346_s11, %s2491_s3 }
  0x16   :  { %p2352_p10 = pnand %p2350_p9, %p2347_p8 }
  0x18   :  { %2355 = shalt.err (!%p2352_p10)
}
  0x19   :  { %s2356_s16 = scalar_lea.vmem %s34_s8, 6144  ;;  %p2361_p12 = scmp.lt.s32.totalorder %s34_s8, %s34_s8 }
  0x1a   :  { %p2357_p11 = scmp.ne.s32.totalorder %s34_s8, %s2356_s16  ;;  %p2362_p13 = scmp.lt.s32.totalorder %s2356_s16, %s2356_s16 }
  0x1c   :  { %p2363_p0 = por %p2362_p13, %p2361_p12 }
  0x1e   :  { %p2364_p1 = pnand %p2363_p0, %p2357_p11 }
  0x20   :  { %2367 = shalt.err (!%p2364_p1)
}
  0x21   :  { %s2376_s1 = smov 64   ;;  %s2377_s17 = smov 4  }
  0x22   :  { %39 = dma.hbm_to_vmem [thread:$0]  %s2491_s3, 6144, %s34_s8, [#allocation5], %s2376_s1, %s2376_s1, %s2377_s17  }
  0x23   :  { %2368 = dma.done.wait [#allocation3], 18432  }
  0x24   :  { %2369 = vsyncadd [#allocation3], 4294948864 }
  0x25   :  { %2370 = dma.done.wait [#allocation5], 6144  }
  0x26   :  { %2371 = vsyncadd [#allocation5], 4294961152  ;;  %v2056_v0 = vld [vmem:[#allocation2 + $0x4] ss:$24 sps:$4 sm:$0xff]   ;;  %v2058_v1 = vld [vmem:[#allocation2] ss:$24 sps:$4 sm:$0xff]  }
  0x27   :  { %965 = vmatprep.subr.bf16.mxu0 %v2056_v0  ;;  %v2059_v2 = vld [vmem:[#allocation2 + $0x34] ss:$24 sps:$4 sm:$0xff]   ;;  %v2061_v3 = vld [vmem:[#allocation2 + $0x30] ss:$24 sps:$4 sm:$0xff]   ;;  %v2062_v4 = vld [vmem:[#allocation2 + $0x64] ss:$24 sps:$4 sm:$0xff]  }
  0x28   :  { %966 = vmatpush1.bf16.msra.mxu0 %v2058_v1  ;;  %v2064_v5 = vld [vmem:[#allocation2 + $0x60] ss:$24 sps:$4 sm:$0xff]   ;;  %v2065_v6 = vld [vmem:[#allocation2 + $0x94] ss:$24 sps:$4 sm:$0xff]   ;;  %v2067_v7 = vld [vmem:[#allocation2 + $0x90] ss:$24 sps:$4 sm:$0xff]  }
  0x29   :  { %967 = vmatprep.subr.bf16.mxu0 %v2059_v2  ;;  %v2080_v8 = vld [vmem:[#allocation2 + $0xc] ss:$24 sps:$4 sm:$0xff]   ;;  %v2084_v10 = vld [vmem:[#allocation2 + $0x8] ss:$24 sps:$4 sm:$0xff]   ;;  %v2086_v11 = vld [vmem:[#allocation2 + $0x3c] ss:$24 sps:$4 sm:$0xff]  }
  0x2a   :  { %v2068_v9 = vld [vmem:[#allocation2 + $0xc4] ss:$24 sps:$4 sm:$0xff]   ;;  %1051 = vmatprep.subr.bf16.mxu1 %v2080_v8  ;;  %v2070_v12 = vld [vmem:[#allocation2 + $0xc0] ss:$24 sps:$4 sm:$0xff]   ;;  %v2071_v13 = vld [vmem:[#allocation2 + $0xf4] ss:$24 sps:$4 sm:$0xff]  }
  0x2b   :  { %1052 = vmatpush1.bf16.msra.mxu1 %v2084_v10  ;;  %v2090_v14 = vld [vmem:[#allocation2 + $0x38] ss:$24 sps:$4 sm:$0xff]   ;;  %v2092_v15 = vld [vmem:[#allocation2 + $0x6c] ss:$24 sps:$4 sm:$0xff]   ;;  %v2096_v17 = vld [vmem:[#allocation2 + $0x68] ss:$24 sps:$4 sm:$0xff]  }
  0x2c   :  { %968 = vmatpush1.bf16.msra.mxu0 %v2061_v3  ;;  %1053 = vmatprep.subr.bf16.mxu1 %v2086_v11  ;;  %v2073_v16 = vld [vmem:[#allocation2 + $0xf0] ss:$24 sps:$4 sm:$0xff]   ;;  %v2098_v18 = vld [vmem:[#allocation2 + $0x9c] ss:$24 sps:$4 sm:$0xff]   ;;  %v2076_v21 = vld [vmem:[#allocation2 + $0x120] ss:$24 sps:$4 sm:$0xff]  }
  0x2d   :  { %969 = vmatprep.subr.bf16.mxu0 %v2062_v4  ;;  %v2074_v19 = vld [vmem:[#allocation2 + $0x124] ss:$24 sps:$4 sm:$0xff]   ;;  %v2102_v20 = vld [vmem:[#allocation2 + $0x98] ss:$24 sps:$4 sm:$0xff]   ;;  %v2077_v23 = vld [vmem:[#allocation2 + $0x154] ss:$24 sps:$4 sm:$0xff]  }
  0x2e   :  { %v2104_v22 = vld [vmem:[#allocation2 + $0xcc] ss:$24 sps:$4 sm:$0xff]   ;;  %v2079_v24 = vld [vmem:[#allocation2 + $0x150] ss:$24 sps:$4 sm:$0xff]   ;;  %v2110_v26 = vld [vmem:[#allocation2 + $0xfc] ss:$24 sps:$4 sm:$0xff]  }
  0x2f   :  { %1054 = vmatpush1.bf16.msra.mxu1 %v2090_v14  ;;  %v2108_v25 = vld [vmem:[#allocation2 + $0xc8] ss:$24 sps:$4 sm:$0xff]   ;;  %v2082_v27 = vld [vmem:[#allocation2 + $0x184] ss:$24 sps:$4 sm:$0xff]   ;;  %v2114_v28 = vld [vmem:[#allocation2 + $0xf8] ss:$24 sps:$4 sm:$0xff]  }
  0x30   :  { %970 = vmatpush1.bf16.msra.mxu0 %v2064_v5  ;;  %1055 = vmatprep.subr.bf16.mxu1 %v2092_v15  ;;  %v2085_v29 = vld [vmem:[#allocation2 + $0x180] ss:$24 sps:$4 sm:$0xff]   ;;  %v2116_v30 = vld [vmem:[#allocation2 + $0x12c] ss:$24 sps:$4 sm:$0xff]   ;;  %v2091_v34 = vld [vmem:[#allocation2 + $0x1b0] ss:$24 sps:$4 sm:$0xff]  }
  0x31   :  { %971 = vmatprep.subr.bf16.mxu0 %v2065_v6  ;;  %v2088_v31 = vld [vmem:[#allocation2 + $0x1b4] ss:$24 sps:$4 sm:$0xff]   ;;  %v2436_v32 = vld [vmem:[%s2488_s0 + $0x4] ss:$12 sps:$4 sm:$0xff]   ;;  %v2120_v33 = vld [vmem:[#allocation2 + $0x128] ss:$24 sps:$4 sm:$0xff]  }
  0x32   :  { %v2122_v35 = vld [vmem:[#allocation2 + $0x15c] ss:$24 sps:$4 sm:$0xff]   ;;  %997 = vmatprep.mubr.bf16.mxu0 %v2436_v32  ;;  %1083 = vmatprep.mubr.bf16.mxu1 %v2436_v32  ;;  %v2097_v37 = vld [vmem:[#allocation2 + $0x1e0] ss:$24 sps:$4 sm:$0xff]   ;;  %v2128_v39 = vld [vmem:[#allocation2 + $0x18c] ss:$24 sps:$4 sm:$0xff]  }
  0x33   :  { %1056 = vmatpush1.bf16.msra.mxu1 %v2096_v17  ;;  %v2094_v36 = vld [vmem:[#allocation2 + $0x1e4] ss:$24 sps:$4 sm:$0xff]   ;;  %v2126_v38 = vld [vmem:[#allocation2 + $0x158] ss:$24 sps:$4 sm:$0xff]   ;;  %v2100_v40 = vld [vmem:[#allocation2 + $0x214] ss:$24 sps:$4 sm:$0xff]  }
  0x34   :  { %972 = vmatpush1.bf16.msra.mxu0 %v2067_v7  ;;  %1057 = vmatprep.subr.bf16.mxu1 %v2098_v18  ;;  %v2135_v41 = vld [vmem:[#allocation2 + $0x188] ss:$24 sps:$4 sm:$0xff]   ;;  %v2137_v43 = vld [vmem:[#allocation2 + $0x1bc] ss:$24 sps:$4 sm:$0xff]   ;;  %v2142_v46 = vld [vmem:[#allocation2 + $0x1b8] ss:$24 sps:$4 sm:$0xff]  }
  0x35   :  { %973 = vmatprep.subr.bf16.mxu0 %v2068_v9  ;;  %v2103_v42 = vld [vmem:[#allocation2 + $0x210] ss:$24 sps:$4 sm:$0xff]   ;;  %v2106_v44 = vld [vmem:[#allocation2 + $0x244] ss:$24 sps:$4 sm:$0xff]   ;;  %v2109_v45 = vld [vmem:[#allocation2 + $0x240] ss:$24 sps:$4 sm:$0xff]  }
  0x36   :  { %v2143_v47 = vld [vmem:[#allocation2 + $0x1ec] ss:$24 sps:$4 sm:$0xff]   ;;  %v2148_v49 = vld [vmem:[#allocation2 + $0x1e8] ss:$24 sps:$4 sm:$0xff]   ;;  %v2149_v51 = vld [vmem:[#allocation2 + $0x21c] ss:$24 sps:$4 sm:$0xff]  }
  0x37   :  { %1058 = vmatpush1.bf16.msra.mxu1 %v2102_v20  ;;  %v2112_v48 = vld [vmem:[#allocation2 + $0x274] ss:$24 sps:$4 sm:$0xff]   ;;  %v2115_v50 = vld [vmem:[#allocation2 + $0x270] ss:$24 sps:$4 sm:$0xff]   ;;  %v2118_v52 = vld [vmem:[#allocation2 + $0x2a4] ss:$24 sps:$4 sm:$0xff]  }
  0x38   :  { %974 = vmatpush1.bf16.msra.mxu0 %v2070_v12  ;;  %1059 = vmatprep.subr.bf16.mxu1 %v2104_v22  ;;  %v2154_v53 = vld [vmem:[#allocation2 + $0x218] ss:$24 sps:$4 sm:$0xff]   ;;  %v2155_v55 = vld [vmem:[#allocation2 + $0x24c] ss:$24 sps:$4 sm:$0xff]   ;;  %v2160_v57 = vld [vmem:[#allocation2 + $0x248] ss:$24 sps:$4 sm:$0xff]  }
  0x39   :  { %975 = vmatprep.subr.bf16.mxu0 %v2071_v13  ;;  %v2121_v54 = vld [vmem:[#allocation2 + $0x2a0] ss:$24 sps:$4 sm:$0xff]   ;;  %v2124_v56 = vld [vmem:[#allocation2 + $0x2d4] ss:$24 sps:$4 sm:$0xff]   ;;  %v2127_v58 = vld [vmem:[#allocation2 + $0x2d0] ss:$24 sps:$4 sm:$0xff]  }
  0x3a   :  { %v2161_v59 = vld [vmem:[#allocation2 + $0x27c] ss:$24 sps:$4 sm:$0xff]   ;;  %v2443_v61 = vld [vmem:[%s2488_s0] ss:$12 sps:$4 sm:$0xff]   ;;  %v2166_v62 = vld [vmem:[#allocation2 + $0x278] ss:$24 sps:$4 sm:$0xff]  }
  0x3b   :  { %1060 = vmatpush1.bf16.msra.mxu1 %v2108_v25  ;;  %v2134_v60 = vld [vmem:[#allocation2 + $0x304] ss:$24 sps:$4 sm:$0xff]   ;;  %v2132_v63 = vld [vmem:[#allocation2 + $0x300] ss:$24 sps:$4 sm:$0xff]   ;;  %v2141_v1 = vld [vmem:[#allocation2 + $0x334] ss:$24 sps:$4 sm:$0xff]  }
  0x3c   :  { %976 = vmatpush1.bf16.msra.mxu0 %v2073_v16  ;;  %1061 = vmatprep.subr.bf16.mxu1 %v2110_v26  ;;  %v2167_v0 = vld [vmem:[#allocation2 + $0x2ac] ss:$24 sps:$4 sm:$0xff]   ;;  %v2172_v2 = vld [vmem:[#allocation2 + $0x2a8] ss:$24 sps:$4 sm:$0xff]   ;;  %v2173_v4 = vld [vmem:[#allocation2 + $0x2dc] ss:$24 sps:$4 sm:$0xff]  }
  0x3d   :  { %977 = vmatprep.subr.bf16.mxu0 %v2074_v19  ;;  %v2139_v3 = vld [vmem:[#allocation2 + $0x330] ss:$24 sps:$4 sm:$0xff]   ;;  %v2147_v5 = vld [vmem:[#allocation2 + $0x364] ss:$24 sps:$4 sm:$0xff]   ;;  %v2378_v6 = vmov 0  }
  0x3e   :  { %v2178_v7 = vld [vmem:[#allocation2 + $0x2d8] ss:$24 sps:$4 sm:$0xff]   ;;  %v2181_v9 = vld [vmem:[#allocation2 + $0x30c] ss:$24 sps:$4 sm:$0xff]   ;;  %v2179_v11 = vld [vmem:[#allocation2 + $0x308] ss:$24 sps:$4 sm:$0xff]  }
  0x3f   :  { %1062 = vmatpush1.bf16.msra.mxu1 %v2114_v28  ;;  %v2145_v8 = vld [vmem:[#allocation2 + $0x360] ss:$24 sps:$4 sm:$0xff]   ;;  %v2153_v10 = vld [vmem:[#allocation2 + $0x394] ss:$24 sps:$4 sm:$0xff]   ;;  %v2151_v12 = vld [vmem:[#allocation2 + $0x390] ss:$24 sps:$4 sm:$0xff]  }
  0x40   :  { %978 = vmatpush1.bf16.msra.mxu0 %v2076_v21  ;;  %1063 = vmatprep.subr.bf16.mxu1 %v2116_v30  ;;  %v2188_v13 = vld [vmem:[#allocation2 + $0x33c] ss:$24 sps:$4 sm:$0xff]   ;;  %v2186_v15 = vld [vmem:[#allocation2 + $0x338] ss:$24 sps:$4 sm:$0xff]   ;;  %v2194_v17 = vld [vmem:[#allocation2 + $0x36c] ss:$24 sps:$4 sm:$0xff]  }
  0x41   :  { %979 = vmatprep.subr.bf16.mxu0 %v2077_v23  ;;  %v2159_v14 = vld [vmem:[#allocation2 + $0x3c4] ss:$24 sps:$4 sm:$0xff]   ;;  %v2157_v16 = vld [vmem:[#allocation2 + $0x3c0] ss:$24 sps:$4 sm:$0xff]   ;;  %v2165_v18 = vld [vmem:[#allocation2 + $0x3f4] ss:$24 sps:$4 sm:$0xff]  }
  0x42   :  { %v2192_v19 = vld [vmem:[#allocation2 + $0x368] ss:$24 sps:$4 sm:$0xff]   ;;  %v2200_v21 = vld [vmem:[#allocation2 + $0x39c] ss:$24 sps:$4 sm:$0xff]   ;;  %v2198_v23 = vld [vmem:[#allocation2 + $0x398] ss:$24 sps:$4 sm:$0xff]  }
  0x43   :  { %1064 = vmatpush1.bf16.msra.mxu1 %v2120_v33  ;;  %v2163_v20 = vld [vmem:[#allocation2 + $0x3f0] ss:$24 sps:$4 sm:$0xff]   ;;  %v2171_v22 = vld [vmem:[#allocation2 + $0x424] ss:$24 sps:$4 sm:$0xff]   ;;  %v2177_v26 = vld [vmem:[#allocation2 + $0x454] ss:$24 sps:$4 sm:$0xff]  }
  0x44   :  { %980 = vmatpush1.bf16.msra.mxu0 %v2079_v24  ;;  %1065 = vmatprep.subr.bf16.mxu1 %v2122_v35  ;;  %v2169_v24 = vld [vmem:[#allocation2 + $0x420] ss:$24 sps:$4 sm:$0xff]   ;;  %v2206_v25 = vld [vmem:[#allocation2 + $0x3cc] ss:$24 sps:$4 sm:$0xff]   ;;  %v2175_v28 = vld [vmem:[#allocation2 + $0x450] ss:$24 sps:$4 sm:$0xff]  }
  0x45   :  { %981 = vmatprep.subr.bf16.mxu0 %v2082_v27  ;;  %v2204_v27 = vld [vmem:[#allocation2 + $0x3c8] ss:$24 sps:$4 sm:$0xff]   ;;  %v2185_v30 = vld [vmem:[#allocation2 + $0x14] ss:$24 sps:$4 sm:$0xff]   ;;  %v2210_v33 = vld [vmem:[#allocation2 + $0x3f8] ss:$24 sps:$4 sm:$0xff]  }
  0x46   :  { %v2218_v35 = vld [vmem:[#allocation2 + $0x42c] ss:$24 sps:$4 sm:$0xff]  }
  0x47   :  { %1066 = vmatpush1.bf16.msra.mxu1 %v2126_v38  ;;  %v2216_v38 = vld [vmem:[#allocation2 + $0x428] ss:$24 sps:$4 sm:$0xff]  }
  0x48   :  { %982 = vmatpush1.bf16.msra.mxu0 %v2085_v29  ;;  %1067 = vmatprep.subr.bf16.mxu1 %v2128_v39  ;;  %v2212_v29 = vld [vmem:[#allocation2 + $0x3fc] ss:$24 sps:$4 sm:$0xff]  }
  0x49   :  { %983 = vmatprep.subr.bf16.mxu0 %v2088_v31  ;;  %v2452_v31 = vld [vmem:[%s2488_s0 + $0x8] ss:$12 sps:$4 sm:$0xff]  }
  0x4a   :  { %v2224_v39 = vld [vmem:[#allocation2 + $0x45c] ss:$24 sps:$4 sm:$0xff]  }
  0x4b   :  { %1068 = vmatpush1.bf16.msra.mxu1 %v2135_v41  ;;  %v2195_v41 = vld [vmem:[#allocation2 + $0x70] ss:$24 sps:$4 sm:$0xff]  }
  0x4c   :  { %984 = vmatpush1.bf16.msra.mxu0 %v2091_v34  ;;  %1069 = vmatprep.subr.bf16.mxu1 %v2137_v43  ;;  %v2183_v34 = vld [vmem:[#allocation2 + $0x10] ss:$24 sps:$4 sm:$0xff]   ;;  %v2276_v43 = vld [vmem:[#allocation4 + $0x40] sm:$0xff]  }
  0x4d   :  { %985 = vmatprep.subr.bf16.mxu0 %v2094_v36  ;;  %v2191_v36 = vld [vmem:[#allocation2 + $0x44] ss:$24 sps:$4 sm:$0xff]  }
  0x4f   :  { %1070 = vmatpush1.bf16.msra.mxu1 %v2142_v46  ;;  %v2277_v46 = vld [vmem:[#allocation4] sm:$0xff]  }
  0x50   :  { %986 = vmatpush1.bf16.msra.mxu0 %v2097_v37  ;;  %1071 = vmatprep.subr.bf16.mxu1 %v2143_v47  ;;  %v2189_v37 = vld [vmem:[#allocation2 + $0x40] ss:$24 sps:$4 sm:$0xff]   ;;  %v2278_v47 = vld [vmem:[#allocation4 + $0x48] sm:$0xff]  }
  0x51   :  { %987 = vmatprep.subr.bf16.mxu0 %v2100_v40  ;;  %v2197_v40 = vld [vmem:[#allocation2 + $0x74] ss:$24 sps:$4 sm:$0xff]  }
  0x53   :  { %1072 = vmatpush1.bf16.msra.mxu1 %v2148_v49  ;;  %v2207_v49 = vld [vmem:[#allocation2 + $0xd0] ss:$24 sps:$4 sm:$0xff]  }
  0x54   :  { %988 = vmatpush1.bf16.msra.mxu0 %v2103_v42  ;;  %1073 = vmatprep.subr.bf16.mxu1 %v2149_v51  ;;  %v2222_v42 = vld [vmem:[#allocation2 + $0x458] ss:$24 sps:$4 sm:$0xff]  }
  0x55   :  { %989 = vmatprep.subr.bf16.mxu0 %v2106_v44  ;;  %v2203_v44 = vld [vmem:[#allocation2 + $0xa4] ss:$24 sps:$4 sm:$0xff]   ;;  %v2280_v51 = vld [vmem:[#allocation4 + $0x50] sm:$0xff]  }
  0x57   :  { %1074 = vmatpush1.bf16.msra.mxu1 %v2154_v53  ;;  %v2213_v53 = vld [vmem:[#allocation2 + $0x100] ss:$24 sps:$4 sm:$0xff]  }
  0x58   :  { %990 = vmatpush1.bf16.msra.mxu0 %v2109_v45  ;;  %1075 = vmatprep.subr.bf16.mxu1 %v2155_v55  ;;  %v2201_v45 = vld [vmem:[#allocation2 + $0xa0] ss:$24 sps:$4 sm:$0xff]   ;;  %v2221_v55 = vld [vmem:[#allocation2 + $0x134] ss:$24 sps:$4 sm:$0xff]  }
  0x59   :  { %991 = vmatprep.subr.bf16.mxu0 %v2112_v48  ;;  %v2209_v48 = vld [vmem:[#allocation2 + $0xd4] ss:$24 sps:$4 sm:$0xff]  }
  0x5b   :  { %1076 = vmatpush1.bf16.msra.mxu1 %v2160_v57  ;;  %v2219_v57 = vld [vmem:[#allocation2 + $0x130] ss:$24 sps:$4 sm:$0xff]  }
  0x5c   :  { %992 = vmatpush1.bf16.msra.mxu0 %v2115_v50  ;;  %1077 = vmatprep.subr.bf16.mxu1 %v2161_v59  ;;  %v2279_v50 = vld [vmem:[#allocation4 + $0x8] sm:$0xff]   ;;  %v2227_v59 = vld [vmem:[#allocation2 + $0x164] ss:$24 sps:$4 sm:$0xff]  }
  0x5d   :  { %993 = vmatprep.subr.bf16.mxu0 %v2118_v52  ;;  %v2281_v52 = vld [vmem:[#allocation4 + $0x10] sm:$0xff]  }
  0x5f   :  { %1078 = vmatpush1.bf16.msra.mxu1 %v2166_v62  ;;  %v2225_v62 = vld [vmem:[#allocation2 + $0x160] ss:$24 sps:$4 sm:$0xff]  }
  0x60   :  { %994 = vmatpush1.bf16.msra.mxu0 %v2121_v54  ;;  %1079 = vmatprep.subr.bf16.mxu1 %v2167_v0  ;;  %v2282_v54 = vld [vmem:[#allocation4 + $0x58] sm:$0xff]   ;;  %v2230_v0 = vld [vmem:[#allocation2 + $0x194] ss:$24 sps:$4 sm:$0xff]  }
  0x61   :  { %995 = vmatprep.subr.bf16.mxu0 %v2124_v56  ;;  %v2283_v56 = vld [vmem:[#allocation4 + $0x18] sm:$0xff]  }
  0x63   :  { %1080 = vmatpush1.bf16.msra.mxu1 %v2172_v2  ;;  %v2228_v2 = vld [vmem:[#allocation2 + $0x190] ss:$24 sps:$4 sm:$0xff]  }
  0x64   :  { %996 = vmatpush1.bf16.msra.mxu0 %v2127_v58  ;;  %1081 = vmatprep.subr.bf16.mxu1 %v2173_v4  ;;  %v2284_v58 = vld [vmem:[#allocation4 + $0x60] sm:$0xff]  }
  0x65   :  { %1008 = vmatprep.subr.bf16.mxu0 %v2134_v60  ;;  %v2285_v60 = vld [vmem:[#allocation4 + $0x20] sm:$0xff]  }
  0x66   :  { %v2231_v4 = vld [vmem:[#allocation2 + $0x1c0] ss:$24 sps:$4 sm:$0xff]  }
  0x67   :  { %998 = vmatmul.mubr.bf16.vlgmr.msra.gmra.mrb[0].mxu0 %v2443_v61  ;;  %1082 = vmatpush1.bf16.msra.mxu1 %v2178_v7  ;;  %v2234_v7 = vld [vmem:[#allocation2 + $0x1f0] ss:$24 sps:$4 sm:$0xff]  }
  0x68   :  { %1009 = vmatpush1.bf16.msra.mxu0 %v2132_v63  ;;  %1040 = vmatprep.mubr.bf16.mxu0 %v2378_v6  ;;  %v2286_v63 = vld [vmem:[#allocation4 + $0x68] sm:$0xff]  }
  0x69   :  { %1010 = vmatprep.subr.bf16.mxu0 %v2141_v1  ;;  %1094 = vmatprep.subr.bf16.mxu1 %v2181_v9  ;;  %v2287_v1 = vld [vmem:[#allocation4 + $0x28] sm:$0xff]   ;;  %v2237_v9 = vld [vmem:[#allocation2 + $0x220] ss:$24 sps:$4 sm:$0xff]  }
  0x6a   :  { %1084 = vmatmul.mubr.bf16.vlgmr.msra.gmra.mrb[0].mxu1 %v2443_v61 }
  0x6b   :  { %1095 = vmatpush1.bf16.msra.mxu1 %v2179_v11  ;;  %1126 = vmatprep.mubr.bf16.mxu1 %v2378_v6  ;;  %v2240_v11 = vld [vmem:[#allocation2 + $0x250] ss:$24 sps:$4 sm:$0xff]  }
  0x6c   :  { %1011 = vmatpush1.bf16.msra.mxu0 %v2139_v3  ;;  %1096 = vmatprep.subr.bf16.mxu1 %v2188_v13  ;;  %v2233_v3 = vld [vmem:[#allocation2 + $0x1c4] ss:$24 sps:$4 sm:$0xff]   ;;  %v2243_v13 = vld [vmem:[#allocation2 + $0x280] ss:$24 sps:$4 sm:$0xff]  }
  0x6d   :  { %1012 = vmatprep.subr.bf16.mxu0 %v2147_v5  ;;  %v2236_v5 = vld [vmem:[#allocation2 + $0x1f4] ss:$24 sps:$4 sm:$0xff]  }
  0x6f   :  { %1097 = vmatpush1.bf16.msra.mxu1 %v2186_v15  ;;  %v2246_v15 = vld [vmem:[#allocation2 + $0x2b0] ss:$24 sps:$4 sm:$0xff]  }
  0x70   :  { %1013 = vmatpush1.bf16.msra.mxu0 %v2145_v8  ;;  %1098 = vmatprep.subr.bf16.mxu1 %v2194_v17  ;;  %v2239_v8 = vld [vmem:[#allocation2 + $0x224] ss:$24 sps:$4 sm:$0xff]   ;;  %v2249_v17 = vld [vmem:[#allocation2 + $0x2e0] ss:$24 sps:$4 sm:$0xff]  }
  0x71   :  { %1014 = vmatprep.subr.bf16.mxu0 %v2153_v10  ;;  %v2242_v10 = vld [vmem:[#allocation2 + $0x254] ss:$24 sps:$4 sm:$0xff]  }
  0x73   :  { %1099 = vmatpush1.bf16.msra.mxu1 %v2192_v19  ;;  %v2252_v19 = vld [vmem:[#allocation2 + $0x310] ss:$24 sps:$4 sm:$0xff]  }
  0x74   :  { %1015 = vmatpush1.bf16.msra.mxu0 %v2151_v12  ;;  %1100 = vmatprep.subr.bf16.mxu1 %v2200_v21  ;;  %v2245_v12 = vld [vmem:[#allocation2 + $0x284] ss:$24 sps:$4 sm:$0xff]   ;;  %v2255_v21 = vld [vmem:[#allocation2 + $0x340] ss:$24 sps:$4 sm:$0xff]  }
  0x75   :  { %1016 = vmatprep.subr.bf16.mxu0 %v2159_v14  ;;  %v2248_v14 = vld [vmem:[#allocation2 + $0x2b4] ss:$24 sps:$4 sm:$0xff]  }
  0x77   :  { %1101 = vmatpush1.bf16.msra.mxu1 %v2198_v23  ;;  %v2258_v23 = vld [vmem:[#allocation2 + $0x370] ss:$24 sps:$4 sm:$0xff]  }
  0x78   :  { %1017 = vmatpush1.bf16.msra.mxu0 %v2157_v16  ;;  %1102 = vmatprep.subr.bf16.mxu1 %v2206_v25  ;;  %v2251_v16 = vld [vmem:[#allocation2 + $0x2e4] ss:$24 sps:$4 sm:$0xff]   ;;  %v2261_v25 = vld [vmem:[#allocation2 + $0x3a0] ss:$24 sps:$4 sm:$0xff]  }
  0x79   :  { %1018 = vmatprep.subr.bf16.mxu0 %v2165_v18  ;;  %v2254_v18 = vld [vmem:[#allocation2 + $0x314] ss:$24 sps:$4 sm:$0xff]  }
  0x7b   :  { %1103 = vmatpush1.bf16.msra.mxu1 %v2204_v27  ;;  %v2264_v27 = vld [vmem:[#allocation2 + $0x3d0] ss:$24 sps:$4 sm:$0xff]  }
  0x7c   :  { %1019 = vmatpush1.bf16.msra.mxu0 %v2163_v20  ;;  %1104 = vmatprep.subr.bf16.mxu1 %v2212_v29  ;;  %v2257_v20 = vld [vmem:[#allocation2 + $0x344] ss:$24 sps:$4 sm:$0xff]   ;;  %v2272_v29 = vld [vmem:[#allocation2 + $0x434] ss:$24 sps:$4 sm:$0xff]  }
  0x7d   :  { %1020 = vmatprep.subr.bf16.mxu0 %v2171_v22  ;;  %v2260_v22 = vld [vmem:[#allocation2 + $0x374] ss:$24 sps:$4 sm:$0xff]  }
  0x7f   :  { %1105 = vmatpush1.bf16.msra.mxu1 %v2210_v33  ;;  %v2270_v33 = vld [vmem:[#allocation2 + $0x430] ss:$24 sps:$4 sm:$0xff]  }
  0x80   :  { %1021 = vmatpush1.bf16.msra.mxu0 %v2169_v24  ;;  %1106 = vmatprep.subr.bf16.mxu1 %v2218_v35  ;;  %v2263_v24 = vld [vmem:[#allocation2 + $0x3a4] ss:$24 sps:$4 sm:$0xff]  }
  0x81   :  { %1022 = vmatprep.subr.bf16.mxu0 %v2177_v26  ;;  %v2266_v26 = vld [vmem:[#allocation2 + $0x3d4] ss:$24 sps:$4 sm:$0xff]   ;;  %v2290_v35 = vld [vmem:[#allocation4 + $0x78] sm:$0xff]  }
  0x83   :  { %1107 = vmatpush1.bf16.msra.mxu1 %v2216_v38  ;;  %v2292_v38 = vld [vmem:[#allocation4 + $0xc0] sm:$0xff]  }
  0x84   :  { %1023 = vmatpush1.bf16.msra.mxu0 %v2175_v28  ;;  %1108 = vmatprep.subr.bf16.mxu1 %v2224_v39  ;;  %v2269_v28 = vld [vmem:[#allocation2 + $0x404] ss:$24 sps:$4 sm:$0xff]   ;;  %v199_v39 = vlaneseq }
  0x85   :  { %1137 = vmatprep.subr.bf16.mxu0 %v2185_v30  ;;  %v2288_v30 = vld [vmem:[#allocation4 + $0x70] sm:$0xff]  }
  0x87   :  { %1041 = vmatmul.mubr.bf16.vlgmr.msra.gmra.mrb[0].mxu0 %v2452_v31  ;;  %1109 = vmatpush1.bf16.msra.mxu1 %v2222_v42  ;;  %v2466_v42 = vld [vmem:[%s2490_s2] sm:$0x3f] }
  0x88   :  { %1138 = vmatpush1.bf16.msra.mxu0 %v2183_v34  ;;  %1169 = vmatprep.mubr.bf16.mxu0 %v2436_v32  ;;  %v2215_v32 = vld [vmem:[#allocation2 + $0x104] ss:$24 sps:$4 sm:$0xff]  }
  0x89   :  { %1139 = vmatprep.subr.bf16.mxu0 %v2191_v36  ;;  %1959 = vmatprep.subr.bf16.mxu1 %v2276_v43  ;;  %v2275_v34 = vld [vmem:[#allocation2 + $0x464] ss:$24 sps:$4 sm:$0xff]  }
  0x8a   :  { %1127 = vmatmul.mubr.bf16.vlgmr.msra.gmra.mrb[0].mxu1 %v2452_v31  ;;  %v2291_v36 = vld [vmem:[#allocation4 + $0x38] sm:$0xff]  }
  0x8b   :  { %1960 = vmatpush3.bf16.msra.mxu1 %v2277_v46 }
  0x8c   :  { %1140 = vmatpush1.bf16.msra.mxu0 %v2189_v37  ;;  %1961 = vmatprep.subr.bf16.mxu1 %v2278_v47  ;;  %v2273_v37 = vld [vmem:[#allocation2 + $0x460] ss:$24 sps:$4 sm:$0xff]  }
  0x8d   :  { %1141 = vmatprep.subr.bf16.mxu0 %v2197_v40  ;;  %v2460_v40 = vshrl.u32 %v199_v39, 7  ;;  %v2318_v39 = vld [vmem:[#allocation4 + $0x168] sm:$0xff]  }
  0x8f   :  { %1962 = vmatpush3.bf16.msra.mxu1 %v2279_v50  ;;  %v205_v43 = vsub.s32 1, %v2460_v40 }
  0x90   :  { %1142 = vmatpush1.bf16.msra.mxu0 %v2195_v41  ;;  %1963 = vmatprep.subr.bf16.mxu1 %v2280_v51  ;;  %v201_v41 = vsub.s32 0, %v2460_v40 }
  0x91   :  { %1143 = vmatprep.subr.bf16.mxu0 %v2203_v44 }
  0x92   :  { %v202_v44 = vrot.slane %v2466_v42, %v201_v41  ;;  %v2319_v41 = vld [vmem:[#allocation4 + $0x128] sm:$0xff]  }
  0x93   :  { %1964 = vmatpush3.bf16.msra.mxu1 %v2281_v52  ;;  %v209_v52 = vsub.s32 2, %v2460_v40 }
  0x94   :  { %1144 = vmatpush1.bf16.msra.mxu0 %v2201_v45  ;;  %1965 = vmatprep.subr.bf16.mxu1 %v2282_v54  ;;  %v206_v45 = vrot.slane %v2466_v42, %v205_v43  ;;  %v2320_v43 = vld [vmem:[#allocation4 + $0x170] sm:$0xff]  }
  0x95   :  { %1145 = vmatprep.subr.bf16.mxu0 %v2209_v48 }
  0x97   :  { %1966 = vmatpush3.bf16.msra.mxu1 %v2283_v56 }
  0x98   :  { %1146 = vmatpush1.bf16.msra.mxu0 %v2207_v49  ;;  %1967 = vmatprep.subr.bf16.mxu1 %v2284_v58 }
  0x99   :  { %1147 = vmatprep.subr.bf16.mxu0 %v2215_v32 }
  0x9b   :  { %1968 = vmatpush3.bf16.msra.mxu1 %v2285_v60  ;;  %v2293_v60 = vld [vmem:[#allocation4 + $0x80] sm:$0xff]  }
  0x9c   :  { %1148 = vmatpush1.bf16.msra.mxu0 %v2213_v53  ;;  %1969 = vmatprep.subr.bf16.mxu1 %v2286_v63  ;;  %v2294_v63 = vld [vmem:[#allocation4 + $0xc8] sm:$0xff]  }
  0x9d   :  { %1149 = vmatprep.subr.bf16.mxu0 %v2221_v55  ;;  %v213_v55 = vsub.s32 3, %v2460_v40 }
  0x9f   :  { %1970 = vmatpush3.bf16.msra.mxu1 %v2287_v1 }
  0xa0   :  { %1150 = vmatpush1.bf16.msra.mxu0 %v2219_v57  ;;  %1971 = vmatprep.subr.bf16.mxu1 %v2288_v30  ;;  %v2310_v30 = vld [vmem:[#allocation4 + $0x148] sm:$0xff]  }
  0xa1   :  { %1151 = vmatprep.subr.bf16.mxu0 %v2227_v59 }
  0xa4   :  { %1152 = vmatpush1.bf16.msra.mxu0 %v2225_v62  ;;  %v210_v62 = vrot.slane %v2466_v42, %v209_v52 }
  0xa5   :  { %1153 = vmatprep.subr.bf16.mxu0 %v2230_v0  ;;  %v214_v0 = vrot.slane %v2466_v42, %v213_v55 }
  0xa8   :  { %1154 = vmatpush1.bf16.msra.mxu0 %v2228_v2  ;;  %v2295_v2 = vld [vmem:[#allocation4 + $0x88] sm:$0xff]  }
  0xa9   :  { %1155 = vmatprep.subr.bf16.mxu0 %v2233_v3 }
  0xac   :  { %1156 = vmatpush1.bf16.msra.mxu0 %v2231_v4 }
  0xad   :  { %1157 = vmatprep.subr.bf16.mxu0 %v2236_v5  ;;  %v2296_v5 = vld [vmem:[#allocation4 + $0xd0] sm:$0xff]  }
  0xb0   :  { %1158 = vmatpush1.bf16.msra.mxu0 %v2234_v7 }
  0xb1   :  { %1159 = vmatprep.subr.bf16.mxu0 %v2239_v8 }
  0xb4   :  { %1160 = vmatpush1.bf16.msra.mxu0 %v2237_v9 }
  0xb5   :  { %1161 = vmatprep.subr.bf16.mxu0 %v2242_v10 }
  0xb8   :  { %1162 = vmatpush1.bf16.msra.mxu0 %v2240_v11 }
  0xb9   :  { %1163 = vmatprep.subr.bf16.mxu0 %v2245_v12 }
  0xbc   :  { %1164 = vmatpush1.bf16.msra.mxu0 %v2243_v13 }
  0xbd   :  { %1165 = vmatprep.subr.bf16.mxu0 %v2248_v14  ;;  %v2297_v14 = vld [vmem:[#allocation4 + $0x90] sm:$0xff]  }
  0xc0   :  { %1166 = vmatpush1.bf16.msra.mxu0 %v2246_v15 }
  0xc1   :  { %1167 = vmatprep.subr.bf16.mxu0 %v2251_v16  ;;  %v2298_v16 = vld [vmem:[#allocation4 + $0xd8] sm:$0xff]  }
  0xc4   :  { %1168 = vmatpush1.bf16.msra.mxu0 %v2249_v17 }
  0xc5   :  { %1180 = vmatprep.subr.bf16.mxu0 %v2254_v18 }
  0xc7   :  { %1170 = vmatmul.mubr.bf16.vlgmr.msra.gmra.mrb[4].mxu0 %v2443_v61  ;;  %v2267_v61 = vld [vmem:[#allocation2 + $0x400] ss:$24 sps:$4 sm:$0xff]  }
  0xc8   :  { %1181 = vmatpush1.bf16.msra.mxu0 %v2252_v19  ;;  %1212 = vmatprep.mubr.bf16.mxu0 %v2378_v6  ;;  %v2289_v6 = vld [vmem:[#allocation4 + $0x30] sm:$0xff]  }
  0xc9   :  { %1182 = vmatprep.subr.bf16.mxu0 %v2257_v20  ;;  %1972 = vmatpush3.bf16.msra.mxu1 %v2289_v6  ;;  %v2299_v20 = vld [vmem:[#allocation4 + $0x98] sm:$0xff]   ;;  %v2311_v6 = vld [vmem:[#allocation4 + $0x108] sm:$0xff]  }
  0xca   :  { %1973 = vmatprep.subr.bf16.mxu1 %v2290_v35  ;;  %v2314_v35 = vld [vmem:[#allocation4 + $0x158] sm:$0xff]  }
  0xcc   :  { %1183 = vmatpush1.bf16.msra.mxu0 %v2255_v21  ;;  %v2300_v21 = vld [vmem:[#allocation4 + $0xe0] sm:$0xff]  }
  0xcd   :  { %1184 = vmatprep.subr.bf16.mxu0 %v2260_v22  ;;  %1974 = vmatpush3.bf16.msra.mxu1 %v2291_v36  ;;  %v2301_v22 = vld [vmem:[#allocation4 + $0xa0] sm:$0xff]   ;;  %v2315_v36 = vld [vmem:[#allocation4 + $0x118] sm:$0xff]  }
  0xce   :  { %1981 = vmatprep.subr.bf16.mxu1 %v2292_v38  ;;  %v2317_v38 = vld [vmem:[#allocation4 + $0x120] sm:$0xff]  }
  0xd0   :  { %1185 = vmatpush1.bf16.msra.mxu0 %v2258_v23  ;;  %v2302_v23 = vld [vmem:[#allocation4 + $0xe8] sm:$0xff]  }
  0xd1   :  { %1186 = vmatprep.subr.bf16.mxu0 %v2263_v24  ;;  %v2303_v24 = vld [vmem:[#allocation4 + $0xa8] sm:$0xff]  }
  0xd4   :  { %1187 = vmatpush1.bf16.msra.mxu0 %v2261_v25  ;;  %v2304_v25 = vld [vmem:[#allocation4 + $0xf0] sm:$0xff]  }
  0xd5   :  { %1188 = vmatprep.subr.bf16.mxu0 %v2266_v26  ;;  %v2305_v26 = vld [vmem:[#allocation4 + $0xb0] sm:$0xff]  }
  0xd8   :  { %1189 = vmatpush1.bf16.msra.mxu0 %v2264_v27  ;;  %v2306_v27 = vld [vmem:[#allocation4 + $0xf8] sm:$0xff]  }
  0xd9   :  { %1190 = vmatprep.subr.bf16.mxu0 %v2269_v28  ;;  %v2307_v28 = vld [vmem:[#allocation4 + $0xb8] sm:$0xff]  }
  0xdc   :  { %1191 = vmatpush1.bf16.msra.mxu0 %v2267_v61  ;;  %v2308_v61 = vld [vmem:[#allocation4 + $0x140] sm:$0xff]  }
  0xdd   :  { %1192 = vmatprep.subr.bf16.mxu0 %v2272_v29  ;;  %v2309_v29 = vld [vmem:[#allocation4 + $0x100] sm:$0xff]  }
  0xe0   :  { %1193 = vmatpush1.bf16.msra.mxu0 %v2270_v33  ;;  %v2312_v33 = vld [vmem:[#allocation4 + $0x150] sm:$0xff]  }
  0xe1   :  { %1194 = vmatprep.subr.bf16.mxu0 %v2275_v34  ;;  %v2313_v34 = vld [vmem:[#allocation4 + $0x110] sm:$0xff]  }
  0xe4   :  { %1195 = vmatpush1.bf16.msra.mxu0 %v2273_v37  ;;  %v2316_v37 = vld [vmem:[#allocation4 + $0x160] sm:$0xff]  }
  0xe7   :  { %1213 = vmatmul.mubr.bf16.vlgmr.msra.gmra.mrb[4].mxu0 %v2452_v31 }
 0x15a   :  { %v1042_v46 = vpop.f32.mrb[0].mxu0 }
 0x15b   :  { %v2025_v47 = vadd.f32 %v1042_v46, %v202_v44  ;;  %v1044_v48 = vpop.f32.mrb[1].mxu0  ;;  %v2323_v46 = vld [vmem:[#allocation4 + $0x138] sm:$0xff]  }
 0x15c   :  { %v2026_v31 = vadd.f32 %v1044_v48, %v206_v45  ;;  %v1046_v49 = vpop.f32.mrb[2].mxu0  ;;  %v221_v48 = vsub.s32 5, %v2460_v40 }
 0x15d   :  { %v2027_v32 = vadd.f32 %v1046_v49, %v202_v44  ;;  %v1048_v50 = vpop.f32.mrb[3].mxu0  ;;  %v1223_v53 = vmax.f32 %v2025_v47, 0.0  ;;  %v1128_v1 = vpop.f32.mrb[0].mxu1  ;;  %v2321_v44 = vld [vmem:[#allocation4 + $0x130] sm:$0xff]   ;;  %v217_v47 = vsub.s32 4, %v2460_v40 }
 0x15e   :  { %v2028_v51 = vadd.f32 %v1048_v50, %v206_v45  ;;  %v1224_v56 = vmax.f32 %v2026_v31, 0.0  ;;  %v2029_v3 = vadd.f32 %v1128_v1, %v210_v62  ;;  %v1130_v4 = vpop.f32.mrb[1].mxu1  ;;  %v2322_v45 = vld [vmem:[#allocation4 + $0x178] sm:$0xff]   ;;  %v222_v49 = vrot.slane %v2466_v42, %v221_v48 }
 0x15f   :  { %v1229_v54 = vmax.f32 %v2027_v32, 0.0  ;;  %v2030_v7 = vadd.f32 %v1130_v4, %v214_v0  ;;  %v1132_v8 = vpop.f32.mrb[2].mxu1  ;;  %v218_v31 = vrot.slane %v2466_v42, %v217_v47  ;;  %v1910_v4 = vld [vmem:[%s2492_s4] ss:$0 sm:$0xff] }
 0x160   :  { %v1230_v57 = vmax.f32 %v2028_v51, 0.0  ;;  %v1225_v9 = vmax.f32 %v2029_v3, 0.0  ;;  %v2031_v10 = vadd.f32 %v1132_v8, %v210_v62  ;;  %v1134_v11 = vpop.f32.mrb[3].mxu1 }
 0x161   :  { %v1235_v58 = vpack.c.bf16 %v1229_v54, %v1223_v53  ;;  %v1226_v12 = vmax.f32 %v2030_v7, 0.0  ;;  %v2032_v13 = vadd.f32 %v1134_v11, %v214_v0 }
 0x162   :  { %v1236_v59 = vpack.c.bf16 %v1230_v57, %v1224_v56  ;;  %v1231_v15 = vmax.f32 %v2031_v10, 0.0 }
 0x163   :  { %v1232_v17 = vmax.f32 %v2032_v13, 0.0 }
 0x164   :  { %1664 = vmatprep.mubr.bf16.mxu1 %v1236_v59  ;;  %v1237_v18 = vpack.c.bf16 %v1231_v15, %v1225_v9 }
 0x165   :  { %1665 = vmatmul.mubr.bf16.vlgmr.msra.gmra.mrb[4].mxu1 %v1235_v58  ;;  %v1238_v19 = vpack.c.bf16 %v1232_v17, %v1226_v12 }
 0x166   :  { %1982 = vmatpush3.bf16.msra.mxu1 %v2293_v60 }
 0x167   :  { %1983 = vmatprep.subr.bf16.mxu1 %v2294_v63  ;;  %1705 = vmatprep.mubr.bf16.mxu1 %v1238_v19 }
 0x16a   :  { %1984 = vmatpush3.bf16.msra.mxu1 %v2295_v2 }
 0x16b   :  { %1985 = vmatprep.subr.bf16.mxu1 %v2296_v5 }
 0x16e   :  { %1986 = vmatpush3.bf16.msra.mxu1 %v2297_v14 }
 0x16f   :  { %1987 = vmatprep.subr.bf16.mxu1 %v2298_v16 }
 0x172   :  { %1988 = vmatpush3.bf16.msra.mxu1 %v2299_v20 }
 0x173   :  { %1989 = vmatprep.subr.bf16.mxu1 %v2300_v21 }
 0x176   :  { %1990 = vmatpush3.bf16.msra.mxu1 %v2301_v22 }
 0x177   :  { %1991 = vmatprep.subr.bf16.mxu1 %v2302_v23 }
 0x17a   :  { %1992 = vmatpush3.bf16.msra.mxu1 %v2303_v24 }
 0x17b   :  { %1993 = vmatprep.subr.bf16.mxu1 %v2304_v25 }
 0x17e   :  { %1994 = vmatpush3.bf16.msra.mxu1 %v2305_v26 }
 0x17f   :  { %1995 = vmatprep.subr.bf16.mxu1 %v2306_v27 }
 0x182   :  { %1996 = vmatpush3.bf16.msra.mxu1 %v2307_v28 }
 0x183   :  { %2003 = vmatprep.subr.bf16.mxu1 %v2308_v61 }
 0x185   :  { %1706 = vmatmul.mubr.bf16.vlgmr.msra.gmra.mrb[8].mxu1 %v1237_v18 }
 0x186   :  { %2004 = vmatpush3.bf16.msra.mxu1 %v2309_v29 }
 0x187   :  { %2005 = vmatprep.subr.bf16.mxu1 %v2310_v30 }
 0x18a   :  { %2006 = vmatpush3.bf16.msra.mxu1 %v2311_v6 }
 0x18b   :  { %2007 = vmatprep.subr.bf16.mxu1 %v2312_v33 }
 0x18e   :  { %2008 = vmatpush3.bf16.msra.mxu1 %v2313_v34 }
 0x18f   :  { %2009 = vmatprep.subr.bf16.mxu1 %v2314_v35 }
 0x192   :  { %2010 = vmatpush3.bf16.msra.mxu1 %v2315_v36 }
 0x193   :  { %2011 = vmatprep.subr.bf16.mxu1 %v2316_v37 }
 0x196   :  { %2012 = vmatpush3.bf16.msra.mxu1 %v2317_v38 }
 0x197   :  { %2013 = vmatprep.subr.bf16.mxu1 %v2318_v39 }
 0x19a   :  { %2014 = vmatpush3.bf16.msra.mxu1 %v2319_v41 }
 0x19b   :  { %2015 = vmatprep.subr.bf16.mxu1 %v2320_v43 }
 0x19e   :  { %2016 = vmatpush3.bf16.msra.mxu1 %v2321_v44 }
 0x19f   :  { %2017 = vmatprep.subr.bf16.mxu1 %v2322_v45 }
 0x1a2   :  { %2018 = vmatpush3.bf16.msra.mxu1 %v2323_v46 }
 0x1ba   :  { %v1214_v32 = vpop.f32.mrb[4].mxu0 }
 0x1bb   :  { %v2033_v50 = vadd.f32 %v1214_v32, %v218_v31  ;;  %v1216_v51 = vpop.f32.mrb[5].mxu0 }
 0x1bc   :  { %v2034_v52 = vadd.f32 %v1216_v51, %v222_v49  ;;  %v1218_v53 = vpop.f32.mrb[6].mxu0 }
 0x1bd   :  { %v2035_v54 = vadd.f32 %v1218_v53, %v218_v31  ;;  %v1220_v55 = vpop.f32.mrb[7].mxu0  ;;  %v1227_v57 = vmax.f32 %v2033_v50, 0.0 }
 0x1be   :  { %v2036_v56 = vadd.f32 %v1220_v55, %v222_v49  ;;  %v1228_v59 = vmax.f32 %v2034_v52, 0.0 }
 0x1bf   :  { %v1233_v58 = vmax.f32 %v2035_v54, 0.0 }
 0x1c0   :  { %v1234_v60 = vmax.f32 %v2036_v56, 0.0 }
 0x1c1   :  { %v1239_v62 = vpack.c.bf16 %v1233_v58, %v1227_v57 }
 0x1c2   :  { %v1240_v63 = vpack.c.bf16 %v1234_v60, %v1228_v59 }
 0x1c4   :  { %1746 = vmatprep.mubr.bf16.mxu1 %v1240_v63 }
 0x1c5   :  { %1747 = vmatmul.mubr.bf16.vlgmr.msra.gmra.mrb[12].mxu1 %v1239_v62 }
 0x238   :  { %v1975_v40 = vpop.f32.mrb[4].mxu1 }
 0x239   :  { %v1976_v0 = vpop.f32.mrb[5].mxu1 }
 0x23a   :  { %v1977_v1 = vadd.f32 %v1976_v0, %v1975_v40  ;;  %v1978_v42 = vpop.f32.mrb[6].mxu1 }
 0x23b   :  { %v1979_v2 = vpop.f32.mrb[7].mxu1 }
 0x23c   :  { %v1980_v3 = vadd.f32 %v1979_v2, %v1978_v42  ;;  %v1667_v8 = vadd.f32 %v1977_v1, %v1910_v4 }
 0x23e   :  { %v1670_v12 = vadd.f32 %v1980_v3, %v1910_v4 }
 0x258   :  { %v1997_v5 = vpop.f32.mrb[8].mxu1 }
 0x259   :  { %v1998_v7 = vpop.f32.mrb[9].mxu1 }
 0x25a   :  { %v1999_v9 = vadd.f32 %v1998_v7, %v1997_v5  ;;  %v2000_v10 = vpop.f32.mrb[10].mxu1 }
 0x25b   :  { %v2001_v11 = vpop.f32.mrb[11].mxu1 }
 0x25c   :  { %v1708_v13 = vadd.f32 %v1999_v9, %v1667_v8  ;;  %v2002_v14 = vadd.f32 %v2001_v11, %v2000_v10 }
 0x25e   :  { %v1711_v15 = vadd.f32 %v2002_v14, %v1670_v12 }
 0x298   :  { %v2019_v16 = vpop.f32.mrb[12].mxu1 }
 0x299   :  { %v2020_v17 = vpop.f32.mrb[13].mxu1 }
 0x29a   :  { %v2021_v18 = vadd.f32 %v2020_v17, %v2019_v16  ;;  %v2022_v19 = vpop.f32.mrb[14].mxu1 }
 0x29b   :  { %v2023_v20 = vpop.f32.mrb[15].mxu1 }
 0x29c   :  { %v1749_v21 = vadd.f32 %v2021_v18, %v1708_v13  ;;  %v2024_v22 = vadd.f32 %v2023_v20, %v2022_v19 }
 0x29e   :  { %1755 = vst [vmem:[%s2493_s5] sm:$0xff] %v1749_v21  ;;  %v1752_v23 = vadd.f32 %v2024_v22, %v1711_v15 }
 0x2a0   :  { %1756 = vst [vmem:[%s2493_s5 + $0x8] sm:$0xff] %v1752_v23 }
 0x2a1   :  { %1761 = vsyncpa [#allocation3], 1 }
 0x2a2   :  { %1762 = vsyncpa [#allocation5], 1 }

</bundles_post_ra>
